<compile_context>
chip_gen: v6e
topology: v6e:2x2x1
jax: 0.10.0
libtpu: 0.0.40
codegen_flags: <defaults>
</compile_context>

<pallas_src>
import jax
import jax.numpy as jnp
from jax.experimental import pallas as pl
from jax.experimental.pallas import tpu as pltpu

D_IN = 384     # pretrained embedding size
D_HID = 192    # linear_0 output size
D_OUT = 8      # number of classes
LN_EPS = 1e-5  # torch.nn.LayerNorm default
TB_CAP = 4096  # batch tile cap (bf16 input: ~6.3 MiB pipeline; f32: ~12.3 MiB)


def _round_up(x, m):
    return ((x + m - 1) // m) * m


def _classifier_kernel(x_ref, w0_ref, b0_ref, w1f_ref, b1f_ref, o_ref):
    # x tile: (TB, 384), bf16 (preferred) or f32. Cast is a no-op when already bf16.
    x = x_ref[...].astype(jnp.bfloat16)

    # linear_0 on the MXU in bf16, f32 accumulate: (TB,384) @ (384,192) + (1,192)
    h = jnp.dot(x, w0_ref[...], preferred_element_type=jnp.float32) + b0_ref[...]

    # ReLU
    h = jnp.maximum(h, 0.0)

    # Dropout(p=0.3): identity under eval/inference semantics.
    # TODO(synk): train-mode nn.Dropout (torch.no_grad() alone does not disable it)
    # is not modeled.

    # LayerNorm over last dim (192), biased variance, eps=1e-5 — f32 on the VPU.
    # The affine (gamma, beta) is folded into (w1f, b1f) at parameter-prep time.
    mean = jnp.mean(h, axis=-1, keepdims=True)
    centered = h - mean
    var = jnp.mean(centered * centered, axis=-1, keepdims=True)
    hn = centered * jax.lax.rsqrt(var + LN_EPS)

    # last_hidden_layer with folded LN affine: (TB,192) @ (192,8) + (1,8)
    logits = jnp.dot(hn.astype(jnp.bfloat16), w1f_ref[...],
                     preferred_element_type=jnp.float32) + b1f_ref[...]

    # Sigmoid: exp + exact reciprocal both land on the EUP slot (free while HBM-bound).
    o_ref[...] = pl.reciprocal(1.0 + jnp.exp(-logits), approx=False)


def prepare_params(w0, b0, gamma, beta, w1, b1):
    """One-time (load-time) parameter prep: bf16 MXU weights + LN-affine folding.

    w0: (384,192), b0: (1,192), gamma/beta: (1,192), w1: (192,8), b1: (1,8);
    linear weights are stored transposed vs. PyTorch so y = x @ W + b.
    """
    w0_bf = w0.astype(jnp.bfloat16)
    b0_f32 = b0.astype(jnp.float32)
    # (xhat*gamma + beta) @ W1 + b1  ==  xhat @ (gamma^T * W1) + (beta @ W1 + b1)
    w1_fold = (gamma.reshape(-1, 1) * w1).astype(jnp.bfloat16)
    b1_fold = (beta @ w1 + b1).astype(jnp.float32)
    return w0_bf, b0_f32, w1_fold, b1_fold


def question_classifier_head(emb, w0_bf, b0, w1f, b1f, *, tb_cap=TB_CAP):
    """emb: (B, 384) bf16 (preferred) or f32 — output of the frozen encoder."""
    B = emb.shape[0]

    # Pad only to a sublane multiple (at most 7 extra rows), never to a full tile.
    b8 = _round_up(max(B, 8), 8)
    if b8 != B:
        emb = jnp.pad(emb, ((0, b8 - B), (0, 0)))

    # Batch tile: cap for VMEM; for large batches split into >=2 steps so the
    # "parallel" batch axis can be sharded across v7x's two TensorCores.
    if b8 > 1024:
        tb = min(tb_cap, _round_up(pl.cdiv(b8, 2), 8))
    else:
        tb = b8
    grid = (pl.cdiv(b8, tb),)

    in_bytes = emb.dtype.itemsize
    weight_bytes = (D_IN * D_HID * 2 + D_HID * 4 + D_HID * D_OUT * 2 + D_OUT * 4)
    cost = pl.CostEstimate(
        flops=2 * b8 * (D_IN * D_HID + D_HID * D_OUT),
        transcendentals=b8 * (D_OUT + 1),
        bytes_accessed=b8 * (D_IN * in_bytes + D_OUT * 4) + weight_bytes,
    )

    out = pl.pallas_call(
        _classifier_kernel,
        out_shape=jax.ShapeDtypeStruct((b8, D_OUT), jnp.float32),
        grid=grid,
        in_specs=[
            pl.BlockSpec((tb, D_IN), lambda i: (i, 0)),        # x tile (streamed)
            pl.BlockSpec((D_IN, D_HID), lambda i: (0, 0)),     # w0 (VMEM-resident)
            pl.BlockSpec((1, D_HID), lambda i: (0, 0)),        # b0
            pl.BlockSpec((D_HID, D_OUT), lambda i: (0, 0)),    # w1 (LN-folded)
            pl.BlockSpec((1, D_OUT), lambda i: (0, 0)),        # b1 (LN-folded)
        ],
        out_specs=pl.BlockSpec((tb, D_OUT), lambda i: (i, 0)),  # narrow (B,8) output
        compiler_params=pltpu.CompilerParams(
            dimension_semantics=("parallel",),
            vmem_limit_bytes=32 << 20),
        cost_estimate=cost,
    )(emb, w0_bf, b0, w1f, b1f)

    return out[:B] if b8 != B else out


def init_params(key):
    """Deterministic synthetic parameters (shapes match the PyTorch module)."""
    k0, k1, k2, k3, k4, k5 = jax.random.split(key, 6)
    w0 = jax.random.normal(k0, (D_IN, D_HID), jnp.float32) * 0.05
    b0 = jax.random.normal(k1, (1, D_HID), jnp.float32) * 0.05
    gamma = 1.0 + 0.1 * jax.random.normal(k2, (1, D_HID), jnp.float32)
    beta = 0.1 * jax.random.normal(k3, (1, D_HID), jnp.float32)
    w1 = jax.random.normal(k4, (D_HID, D_OUT), jnp.float32) * 0.05
    b1 = jax.random.normal(k5, (1, D_OUT), jnp.float32) * 0.05
    return w0, b0, gamma, beta, w1, b1


def reference_head(emb, w0, b0, gamma, beta, w1, b1):
    """Pure-JAX f32 reference for correctness checking."""
    h = emb @ w0 + b0
    h = jnp.maximum(h, 0.0)
    mean = jnp.mean(h, axis=-1, keepdims=True)
    var = jnp.mean((h - mean) ** 2, axis=-1, keepdims=True)
    hn = (h - mean) / jnp.sqrt(var + LN_EPS) * gamma + beta
    logits = hn @ w1 + b1
    return jax.nn.sigmoid(logits)


if __name__ == "__main__":
    key = jax.random.PRNGKey(0)
    k_x, k_p = jax.random.split(key)

    B = 8  # small batch of "sentences" -> frozen encoder embeddings
    # Encoder emits bf16 directly (halves the dominant HBM input stream);
    # no wrapper-side astype is ever added.
    emb = jax.random.normal(k_x, (B, D_IN), jnp.bfloat16)

    raw_params = init_params(k_p)
    prepped = prepare_params(*raw_params)   # hoisted one-time weight prep

    out = question_classifier_head(emb, *prepped)
    out = jax.block_until_ready(out)

    ref = reference_head(emb.astype(jnp.float32), *raw_params)
    assert out.shape == (B, D_OUT)
    # Tolerance covers bf16 MXU operands (sigmoid outputs in [0,1]).
    assert jnp.allclose(out, ref, atol=2e-2, rtol=2e-2), "mismatch vs reference"

    print("KERNEL_OK")
</pallas_src>

<mosaic_0001>
module attributes {stable_mosaic.version = 11 : i64} {
  func.func @_classifier_kernel(%arg0: i32, %arg1: memref<8x384xbf16, #tpu.memory_space<vmem>>, %arg2: memref<384x192xbf16, #tpu.memory_space<vmem>>, %arg3: memref<1x192xf32, #tpu.memory_space<vmem>>, %arg4: memref<192x8xbf16, #tpu.memory_space<vmem>>, %arg5: memref<1x8xf32, #tpu.memory_space<vmem>>, %arg6: memref<8x8xf32, #tpu.memory_space<vmem>>) attributes {dimension_semantics = [#tpu.dimension_semantics<parallel>], iteration_bounds = array<i64: 1>, scalar_prefetch = 0 : i64, scratch_operands = 0 : i64, tpu.core_type = #tpu.core_type<tc>, window_params = [{transform_indices = @transform_0, window_bounds = array<i64: 8, 384>}, {pipeline_mode = #tpu.pipeline_mode<synchronous>, transform_indices = @transform_1, window_bounds = array<i64: 384, 192>}, {pipeline_mode = #tpu.pipeline_mode<synchronous>, transform_indices = @transform_2, window_bounds = array<i64: 1, 192>}, {pipeline_mode = #tpu.pipeline_mode<synchronous>, transform_indices = @transform_3, window_bounds = array<i64: 192, 8>}, {pipeline_mode = #tpu.pipeline_mode<synchronous>, transform_indices = @transform_4, window_bounds = array<i64: 1, 8>}, {transform_indices = @transform_5, window_bounds = array<i64: 8, 8>}]} {
    %c0 = arith.constant 0 : index
    %c0_0 = arith.constant 0 : index
    %0 = vector.load %arg1[%c0, %c0_0] : memref<8x384xbf16, #tpu.memory_space<vmem>>, vector<8x384xbf16>
    %c0_1 = arith.constant 0 : index
    %c0_2 = arith.constant 0 : index
    %1 = vector.load %arg2[%c0_1, %c0_2] : memref<384x192xbf16, #tpu.memory_space<vmem>>, vector<384x192xbf16>
    %cst = arith.constant dense<0.000000e+00> : vector<8x192xf32>
    %2 = tpu.matmul %0, %1, %cst {dimension_numbers = #tpu.dot_dimension_numbers<[1], [0], [0], [1], [0, 0, 1, 1], [], []>} : vector<8x384xbf16>, vector<384x192xbf16>, vector<8x192xf32> -> vector<8x192xf32>
    %c0_3 = arith.constant 0 : index
    %c0_4 = arith.constant 0 : index
    %3 = vector.load %arg3[%c0_3, %c0_4] : memref<1x192xf32, #tpu.memory_space<vmem>>, vector<1x192xf32>
    %4 = vector.broadcast %3 : vector<1x192xf32> to vector<8x192xf32>
    %5 = arith.addf %2, %4 : vector<8x192xf32>
    %cst_5 = arith.constant 0.000000e+00 : f32
    %6 = vector.broadcast %cst_5 : f32 to vector<8x192xf32>
    %7 = arith.maximumf %5, %6 : vector<8x192xf32>
    %cst_6 = arith.constant dense<0.000000e+00> : vector<8xf32>
    %8 = vector.multi_reduction <add>, %7, %cst_6 [1] : vector<8x192xf32> to vector<8xf32>
    %9 = vector.shape_cast %8 : vector<8xf32> to vector<8x1xf32>
    %cst_7 = arith.constant 1.920000e+02 : f32
    %10 = vector.broadcast %cst_7 : f32 to vector<8x1xf32>
    %11 = arith.divf %9, %10 : vector<8x1xf32>
    %12 = vector.broadcast %11 : vector<8x1xf32> to vector<8x192xf32>
    %13 = arith.subf %7, %12 : vector<8x192xf32>
    %14 = arith.mulf %13, %13 : vector<8x192xf32>
    %cst_8 = arith.constant dense<0.000000e+00> : vector<8xf32>
    %15 = vector.multi_reduction <add>, %14, %cst_8 [1] : vector<8x192xf32> to vector<8xf32>
    %16 = vector.shape_cast %15 : vector<8xf32> to vector<8x1xf32>
    %cst_9 = arith.constant 1.920000e+02 : f32
    %17 = vector.broadcast %cst_9 : f32 to vector<8x1xf32>
    %18 = arith.divf %16, %17 : vector<8x1xf32>
    %cst_10 = arith.constant 9.99999974E-6 : f32
    %19 = vector.broadcast %cst_10 : f32 to vector<8x1xf32>
    %20 = arith.addf %18, %19 : vector<8x1xf32>
    %21 = math.rsqrt %20 : vector<8x1xf32>
    %22 = vector.broadcast %21 : vector<8x1xf32> to vector<8x192xf32>
    %23 = arith.mulf %13, %22 : vector<8x192xf32>
    %24 = arith.truncf %23 : vector<8x192xf32> to vector<8x192xbf16>
    %c0_11 = arith.constant 0 : index
    %c0_12 = arith.constant 0 : index
    %25 = vector.load %arg4[%c0_11, %c0_12] : memref<192x8xbf16, #tpu.memory_space<vmem>>, vector<192x8xbf16>
    %cst_13 = arith.constant dense<0.000000e+00> : vector<8x8xf32>
    %26 = tpu.matmul %24, %25, %cst_13 {dimension_numbers = #tpu.dot_dimension_numbers<[1], [0], [0], [1], [0, 0, 1, 1], [], []>} : vector<8x192xbf16>, vector<192x8xbf16>, vector<8x8xf32> -> vector<8x8xf32>
    %c0_14 = arith.constant 0 : index
    %c0_15 = arith.constant 0 : index
    %27 = vector.load %arg5[%c0_14, %c0_15] : memref<1x8xf32, #tpu.memory_space<vmem>>, vector<1x8xf32>
    %28 = vector.broadcast %27 : vector<1x8xf32> to vector<8x8xf32>
    %29 = arith.addf %26, %28 : vector<8x8xf32>
    %cst_16 = arith.constant 0.000000e+00 : f32
    %30 = vector.broadcast %cst_16 : f32 to vector<8x8xf32>
    %31 = arith.subf %30, %29 : vector<8x8xf32>
    %32 = math.exp %31 : vector<8x8xf32>
    %cst_17 = arith.constant 1.000000e+00 : f32
    %33 = vector.broadcast %cst_17 : f32 to vector<8x8xf32>
    %34 = arith.addf %33, %32 : vector<8x8xf32>
    %35 = tpu.reciprocal %34 : vector<8x8xf32> -> vector<8x8xf32>
    %c0_18 = arith.constant 0 : index
    %c0_19 = arith.constant 0 : index
    %36 = vector.load %arg6[%c0_18, %c0_19] : memref<8x8xf32, #tpu.memory_space<vmem>>, vector<8x8xf32>
    tpu.vector_store %arg6[%c0_18, %c0_19], %35 {strides = array<i32>} : memref<8x8xf32, #tpu.memory_space<vmem>>, vector<8x8xf32>,
    return
  }
  func.func @transform_0(%arg0: i32) -> (i32, i32) {
    %c0_i32 = arith.constant 0 : i32
    %c0_i32_0 = arith.constant 0 : i32
    return %arg0, %c0_i32 : i32, i32
  }
  func.func @transform_1(%arg0: i32) -> (i32, i32) {
    %c0_i32 = arith.constant 0 : i32
    %c0_i32_0 = arith.constant 0 : i32
    %c0_i32_1 = arith.constant 0 : i32
    return %c0_i32, %c0_i32_0 : i32, i32
  }
  func.func @transform_2(%arg0: i32) -> (i32, i32) {
    %c0_i32 = arith.constant 0 : i32
    %c0_i32_0 = arith.constant 0 : i32
    %c0_i32_1 = arith.constant 0 : i32
    return %c0_i32, %c0_i32_0 : i32, i32
  }
  func.func @transform_3(%arg0: i32) -> (i32, i32) {
    %c0_i32 = arith.constant 0 : i32
    %c0_i32_0 = arith.constant 0 : i32
    %c0_i32_1 = arith.constant 0 : i32
    return %c0_i32, %c0_i32_0 : i32, i32
  }
  func.func @transform_4(%arg0: i32) -> (i32, i32) {
    %c0_i32 = arith.constant 0 : i32
    %c0_i32_0 = arith.constant 0 : i32
    %c0_i32_1 = arith.constant 0 : i32
    return %c0_i32, %c0_i32_0 : i32, i32
  }
  func.func @transform_5(%arg0: i32) -> (i32, i32) {
    %c0_i32 = arith.constant 0 : i32
    %c0_i32_0 = arith.constant 0 : i32
    return %arg0, %c0_i32 : i32, i32
  }
}

</mosaic_0001>

<bundles_post_ra>
// kernel: tpu_custom_call.1
= control target key start
LH: loop header
LB: loop body
LE: loop exit
PB: predicated region body
PF: predicated region fallthrough
CT: control target
= control target key end

     0   :  { %v790_v2 = vmov 0   ;;  %s1033_s0 = inlined_call_operand.vmem [shape: bf16[8,384], index: 0, kind: input, shape index: {}]   ;;  %s1034_s1 = inlined_call_operand.vmem [shape: bf16[384,192], index: 1, kind: input, shape index: {}]   ;;  %s1035_s2 = inlined_call_operand.vmem [shape: f32[1,192], index: 2, kind: input, shape index: {}]   ;;  %s1036_s3 = inlined_call_operand.vmem [shape: bf16[192,8], index: 3, kind: input, shape index: {}]   ;;  %s1037_s4 = inlined_call_operand.vmem [shape: f32[1,8], index: 4, kind: input, shape index: {}]   ;;  %s1038_s5 = inlined_call_operand.hbm [shape: f32[8,8], index: 5, kind: output, shape index: {}]  }
   0x1   :  { %v675_v0 = vld [vmem:[%s1034_s1 + $0x74] ss:$8 sps:$4 sm:$0xff]   ;;  %v677_v1 = vld [vmem:[%s1034_s1 + $0x70] ss:$8 sps:$4 sm:$0xff]   ;;  %408 = vmatprep.mubr.bf16.mxu1 %v790_v2  ;;  %v678_v3 = vld [vmem:[%s1034_s1 + $0x64] ss:$8 sps:$4 sm:$0xff]  }
   0x2   :  { %335 = vmatprep.subr.bf16.mxu0 %v675_v0  ;;  %v680_v4 = vld [vmem:[%s1034_s1 + $0x60] ss:$8 sps:$4 sm:$0xff]   ;;  %v681_v5 = vld [vmem:[%s1034_s1 + $0x54] ss:$8 sps:$4 sm:$0xff]   ;;  %v683_v6 = vld [vmem:[%s1034_s1 + $0x50] ss:$8 sps:$4 sm:$0xff]  }
   0x3   :  { %336 = vmatpush1.bf16.msra.mxu0 %v677_v1  ;;  %v684_v7 = vld [vmem:[%s1034_s1 + $0x44] ss:$8 sps:$4 sm:$0xff]   ;;  %v686_v8 = vld [vmem:[%s1034_s1 + $0x40] ss:$8 sps:$4 sm:$0xff]   ;;  %v698_v9 = vld [vmem:[%s1034_s1 + $0x174] ss:$8 sps:$4 sm:$0xff]  }
   0x4   :  { %337 = vmatprep.subr.bf16.mxu0 %v678_v3  ;;  %v701_v10 = vld [vmem:[%s1034_s1 + $0x170] ss:$8 sps:$4 sm:$0xff]   ;;  %v687_v11 = vld [vmem:[%s1034_s1 + $0x34] ss:$8 sps:$4 sm:$0xff]   ;;  %376 = vmatprep.subr.bf16.mxu1 %v698_v9  ;;  %v704_v12 = vld [vmem:[%s1034_s1 + $0x164] ss:$8 sps:$4 sm:$0xff]  }
   0x5   :  { %377 = vmatpush1.bf16.msra.mxu1 %v701_v10  ;;  %v707_v13 = vld [vmem:[%s1034_s1 + $0x160] ss:$8 sps:$4 sm:$0xff]   ;;  %v689_v14 = vld [vmem:[%s1034_s1 + $0x30] ss:$8 sps:$4 sm:$0xff]   ;;  %v690_v15 = vld [vmem:[%s1034_s1 + $0x24] ss:$8 sps:$4 sm:$0xff]  }
   0x6   :  { %378 = vmatprep.subr.bf16.mxu1 %v704_v12  ;;  %v710_v16 = vld [vmem:[%s1034_s1 + $0x154] ss:$8 sps:$4 sm:$0xff]   ;;  %v713_v17 = vld [vmem:[%s1034_s1 + $0x150] ss:$8 sps:$4 sm:$0xff]   ;;  %v692_v18 = vld [vmem:[%s1034_s1 + $0x20] ss:$8 sps:$4 sm:$0xff]  }
   0x7   :  { %338 = vmatpush1.bf16.msra.mxu0 %v680_v4  ;;  %v716_v19 = vld [vmem:[%s1034_s1 + $0x144] ss:$8 sps:$4 sm:$0xff]   ;;  %v693_v20 = vld [vmem:[%s1034_s1 + $0x14] ss:$8 sps:$4 sm:$0xff]   ;;  %v695_v21 = vld [vmem:[%s1034_s1 + $0x10] ss:$8 sps:$4 sm:$0xff]  }
   0x8   :  { %339 = vmatprep.subr.bf16.mxu0 %v681_v5  ;;  %v719_v22 = vld [vmem:[%s1034_s1 + $0x140] ss:$8 sps:$4 sm:$0xff]   ;;  %v722_v23 = vld [vmem:[%s1034_s1 + $0x134] ss:$8 sps:$4 sm:$0xff]   ;;  %v696_v24 = vld [vmem:[%s1034_s1 + $0x4] ss:$8 sps:$4 sm:$0xff]  }
   0x9   :  { %379 = vmatpush1.bf16.msra.mxu1 %v707_v13  ;;  %v725_v25 = vld [vmem:[%s1034_s1 + $0x130] ss:$8 sps:$4 sm:$0xff]   ;;  %v700_v26 = vld [vmem:[%s1034_s1] ss:$8 sps:$4 sm:$0xff]   ;;  %v728_v27 = vld [vmem:[%s1034_s1 + $0x124] ss:$8 sps:$4 sm:$0xff]  }
   0xa   :  { %380 = vmatprep.subr.bf16.mxu1 %v710_v16  ;;  %v702_v28 = vld [vmem:[%s1034_s1 + $0xf4] ss:$8 sps:$4 sm:$0xff]   ;;  %v706_v29 = vld [vmem:[%s1034_s1 + $0xf0] ss:$8 sps:$4 sm:$0xff]   ;;  %v731_v30 = vld [vmem:[%s1034_s1 + $0x120] ss:$8 sps:$4 sm:$0xff]  }
   0xb   :  { %340 = vmatpush1.bf16.msra.mxu0 %v683_v6  ;;  %v734_v31 = vld [vmem:[%s1034_s1 + $0x114] ss:$8 sps:$4 sm:$0xff]   ;;  %v708_v32 = vld [vmem:[%s1034_s1 + $0xe4] ss:$8 sps:$4 sm:$0xff]   ;;  %v737_v33 = vld [vmem:[%s1034_s1 + $0x110] ss:$8 sps:$4 sm:$0xff]  }
   0xc   :  { %341 = vmatprep.subr.bf16.mxu0 %v684_v7  ;;  %v22_v34 = vld [vmem:[%s1033_s0] sm:$0xff]  ;;  %v714_v38 = vld [vmem:[%s1034_s1 + $0xd4] ss:$8 sps:$4 sm:$0xff]   ;;  %v718_v40 = vld [vmem:[%s1034_s1 + $0xd0] ss:$8 sps:$4 sm:$0xff]  }
   0xd   :  { %381 = vmatpush1.bf16.msra.mxu1 %v713_v17  ;;  %v712_v35 = vld [vmem:[%s1034_s1 + $0xe0] ss:$8 sps:$4 sm:$0xff]   ;;  %v740_v36 = vld [vmem:[%s1034_s1 + $0x104] ss:$8 sps:$4 sm:$0xff]   ;;  %v609_v37 = vcombine.high %v22_v34, %v22_v34 }
   0xe   :  { %382 = vmatprep.subr.bf16.mxu1 %v716_v19  ;;  %v743_v39 = vld [vmem:[%s1034_s1 + $0x100] ss:$8 sps:$4 sm:$0xff]   ;;  %v720_v41 = vld [vmem:[%s1034_s1 + $0xc4] ss:$8 sps:$4 sm:$0xff]  }
   0xf   :  { %342 = vmatpush1.bf16.msra.mxu0 %v686_v8  ;;  %367 = vmatprep.mubr.bf16.mxu0 %v609_v37  ;;  %v746_v42 = vld [vmem:[%s1033_s0 + $0x8] ss:$0 sps:$4 sm:$0xff]  }
  0x10   :  { %343 = vmatprep.subr.bf16.mxu0 %v687_v11 }
  0x11   :  { %383 = vmatpush1.bf16.msra.mxu1 %v719_v22 }
  0x12   :  { %384 = vmatprep.subr.bf16.mxu1 %v722_v23 }
  0x13   :  { %344 = vmatpush1.bf16.msra.mxu0 %v689_v14 }
  0x14   :  { %345 = vmatprep.subr.bf16.mxu0 %v690_v15 }
  0x15   :  { %385 = vmatpush1.bf16.msra.mxu1 %v725_v25 }
  0x16   :  { %386 = vmatprep.subr.bf16.mxu1 %v728_v27 }
  0x17   :  { %346 = vmatpush1.bf16.msra.mxu0 %v692_v18 }
  0x18   :  { %347 = vmatprep.subr.bf16.mxu0 %v693_v20 }
  0x19   :  { %387 = vmatpush1.bf16.msra.mxu1 %v731_v30 }
  0x1a   :  { %388 = vmatprep.subr.bf16.mxu1 %v734_v31 }
  0x1b   :  { %348 = vmatpush1.bf16.msra.mxu0 %v695_v21 }
  0x1c   :  { %349 = vmatprep.subr.bf16.mxu0 %v696_v24 }
  0x1d   :  { %389 = vmatpush1.bf16.msra.mxu1 %v737_v33 }
  0x1e   :  { %390 = vmatprep.subr.bf16.mxu1 %v740_v36 }
  0x1f   :  { %350 = vmatpush1.bf16.msra.mxu0 %v700_v26 }
  0x20   :  { %351 = vmatprep.subr.bf16.mxu0 %v702_v28 }
  0x23   :  { %352 = vmatpush2.bf16.msra.mxu0 %v706_v29 }
  0x24   :  { %353 = vmatprep.subr.bf16.mxu0 %v708_v32 }
  0x27   :  { %354 = vmatpush2.bf16.msra.mxu0 %v712_v35 }
  0x28   :  { %355 = vmatprep.subr.bf16.mxu0 %v714_v38 }
  0x29   :  { %10 = vsyncpa [#allocation3], 0  ;;  %391 = vmatpush1.bf16.msra.mxu1 %v743_v39  ;;  %v724_v43 = vld [vmem:[%s1034_s1 + $0xc0] ss:$8 sps:$4 sm:$0xff]   ;;  %v726_v44 = vld [vmem:[%s1034_s1 + $0xb4] ss:$8 sps:$4 sm:$0xff]   ;;  %v608_v52 = vcombine.low %v22_v34, %v22_v34  ;;  %v74_v56 = vlaneseq }
  0x2a   :  { %547 = vmatprep.subr.bf16.mxu1 %v790_v2  ;;  %v730_v45 = vld [vmem:[%s1034_s1 + $0xb0] ss:$8 sps:$4 sm:$0xff]   ;;  %v732_v46 = vld [vmem:[%s1034_s1 + $0xa4] ss:$8 sps:$4 sm:$0xff]   ;;  %v736_v47 = vld [vmem:[%s1034_s1 + $0xa0] ss:$8 sps:$4 sm:$0xff]  }
  0x2b   :  { %356 = vmatpush2.bf16.msra.mxu0 %v718_v40  ;;  %v738_v48 = vld [vmem:[%s1034_s1 + $0x94] ss:$8 sps:$4 sm:$0xff]   ;;  %v742_v49 = vld [vmem:[%s1034_s1 + $0x90] ss:$8 sps:$4 sm:$0xff]   ;;  %v744_v50 = vld [vmem:[%s1034_s1 + $0x84] ss:$8 sps:$4 sm:$0xff]  }
  0x2c   :  { %357 = vmatprep.subr.bf16.mxu0 %v720_v41  ;;  %409 = vmatmul.mubr.bf16.vlgmr.msra.gmra.mxu1 %v746_v42  ;;  %v747_v51 = vld [vmem:[%s1034_s1 + $0x80] ss:$8 sps:$4 sm:$0xff]   ;;  %v75_v58 = vshrl.u32 %v74_v56, 7  ;;  %vm419_vm0 = vcmask 523264   ;;  %v750_v13 = vld [vmem:[%s1036_s3 + $0x38] sm:$0xff]   ;;  %v751_v14 = vld [vmem:[%s1036_s3 + $0x30] sm:$0xff]  }
  0x2d   :  { %v72_v60 = vld [vmem:[%s1035_s2] sm:$0x3]  ;;  %548 = vmatpush1.bf16.msra.mxu1 %v750_v13  ;;  %v752_v15 = vld [vmem:[%s1036_s3 + $0x28] sm:$0xff]   ;;  %v754_v17 = vld [vmem:[%s1036_s3 + $0x18] sm:$0xff]   ;;  %vm592_vm1 = vcmask 64512  }
  0x2e   :  { %v76_v59 = vsub.s32 0, %v75_v58  ;;  %v80_v61 = vsub.s32 1, %v75_v58  ;;  %549 = vmatprep.subr.bf16.mxu1 %v790_v2  ;;  %v753_v16 = vld [vmem:[%s1036_s3 + $0x20] sm:$0xff]   ;;  %v755_v18 = vld [vmem:[%s1036_s3 + $0x10] sm:$0xff]   ;;  %v756_v27 = vld [vmem:[%s1036_s3 + $0x8] sm:$0xff]  }
  0x2f   :  { %358 = vmatpush2.bf16.msra.mxu0 %v724_v43  ;;  %v757_v28 = vld [vmem:[%s1036_s3] sm:$0xff]   ;;  %v758_v29 = vld [vmem:[%s1036_s3 + $0x58] sm:$0xff]   ;;  %v759_v30 = vld [vmem:[%s1036_s3 + $0x50] sm:$0xff]  }
  0x30   :  { %359 = vmatprep.subr.bf16.mxu0 %v726_v44  ;;  %v77_v62 = vrot.slane %v72_v60, %v76_v59  ;;  %v81_v63 = vrot.slane %v72_v60, %v80_v61  ;;  %v760_v31 = vld [vmem:[%s1036_s3 + $0x48] sm:$0xff]   ;;  %v761_v32 = vld [vmem:[%s1036_s3 + $0x40] sm:$0xff]   ;;  %s791_s3 = smov [#allocation2]  }
  0x31   :  { %550 = vmatpush1.bf16.msra.mxu1 %v751_v14  ;;  %v659_v41 = vld [vmem:[%s1037_s4] ss:$0 sm:$0xff]  ;;  %s600_s17 = sshll.u32 %s791_s3, 4  ;;  %s601_s17 = int_to_ptr.vmem [resolvable:$true] %s600_s17 }
  0x32   :  { %551 = vmatprep.subr.bf16.mxu1 %v790_v2  ;;  %s768_s18 = scalar_lea.vmem %s601_s17, 128  ;;  %p773_p1 = scmp.lt.s32.totalorder %s601_s17, %s601_s17 }
  0x33   :  { %360 = vmatpush2.bf16.msra.mxu0 %v730_v45  ;;  %p769_p0 = scmp.ne.s32.totalorder %s601_s17, %s768_s18  ;;  %p774_p2 = scmp.lt.s32.totalorder %s768_s18, %s768_s18 }
  0x34   :  { %361 = vmatprep.subr.bf16.mxu0 %v732_v46 }
  0x35   :  { %552 = vmatpush1.bf16.msra.mxu1 %v752_v15  ;;  %p775_p3 = por %p774_p2, %p773_p1 }
  0x36   :  { %553 = vmatprep.subr.bf16.mxu1 %v790_v2 }
  0x37   :  { %362 = vmatpush2.bf16.msra.mxu0 %v736_v47  ;;  %p776_p4 = pnand %p775_p3, %p769_p0 }
  0x38   :  { %363 = vmatprep.subr.bf16.mxu0 %v738_v48 }
  0x39   :  { %554 = vmatpush1.bf16.msra.mxu1 %v753_v16 }
  0x3a   :  { %555 = vmatprep.subr.bf16.mxu1 %v790_v2 }
  0x3b   :  { %364 = vmatpush2.bf16.msra.mxu0 %v742_v49 }
  0x3c   :  { %365 = vmatprep.subr.bf16.mxu0 %v744_v50 }
  0x3d   :  { %556 = vmatpush1.bf16.msra.mxu1 %v754_v17 }
  0x3e   :  { %557 = vmatprep.subr.bf16.mxu1 %v790_v2 }
  0x3f   :  { %366 = vmatpush2.bf16.msra.mxu0 %v747_v51 }
  0x41   :  { %558 = vmatpush1.bf16.msra.mxu1 %v755_v18 }
  0x42   :  { %368 = vmatmul.mubr.bf16.vlgmr.msra.gmra.mxu0 %v608_v52  ;;  %559 = vmatprep.subr.bf16.mxu1 %v790_v2 }
  0x45   :  { %560 = vmatpush1.bf16.msra.mxu1 %v756_v27 }
  0x46   :  { %561 = vmatprep.subr.bf16.mxu1 %v790_v2 }
  0x49   :  { %562 = vmatpush1.bf16.msra.mxu1 %v757_v28 }
  0x4a   :  { %571 = vmatprep.subr.bf16.mxu1 %v790_v2 }
  0x4d   :  { %572 = vmatpush2.bf16.msra.mxu1 %v758_v29 }
  0x4e   :  { %573 = vmatprep.subr.bf16.mxu1 %v790_v2 }
  0x51   :  { %574 = vmatpush2.bf16.msra.mxu1 %v759_v30 }
  0x52   :  { %575 = vmatprep.subr.bf16.mxu1 %v790_v2 }
  0x55   :  { %576 = vmatpush2.bf16.msra.mxu1 %v760_v31 }
  0x56   :  { %577 = vmatprep.subr.bf16.mxu1 %v790_v2 }
  0x59   :  { %578 = vmatpush2.bf16.msra.mxu1 %v761_v32 }
  0xec   :  { %v410_v53 = vpop.f32.mrf.mxu1 }
  0xee   :  { %v412_v54 = vpop.f32.mrf.mxu1 }
  0xf0   :  { %v414_v55 = vpop.f32.mrf.mxu1 }
  0xf2   :  { %v415_v57 = vpop.f32.mrf.mxu1 }
 0x102   :  { %v369_v0 = vpop.f32.mrf.mxu0 }
 0x103   :  { %v370_v1 = vadd.f32 %v369_v0, %v77_v62 }
 0x104   :  { %v371_v3 = vpop.f32.mrf.mxu0 }
 0x105   :  { %v372_v4 = vadd.f32 %v371_v3, %v81_v63  ;;  %v411_v6 = vadd.f32 %v410_v53, %v370_v1 }
 0x106   :  { %v373_v5 = vpop.f32.mrf.mxu0 }
 0x107   :  { %v413_v7 = vadd.f32 %v412_v54, %v372_v4  ;;  %v417_v10 = vmax.f32 %v411_v6, 0.0 }
 0x108   :  { %v374_v8 = vpop.f32.mrf.mxu0 }
 0x109   :  { %v418_v9 = vmax.f32 %v413_v7, 0.0 }
 0x10b   :  { %v420_v11 = vsel %vm419_vm0, %v418_v9, 0.0 }
 0x10c   :  { %v421_v12 = vadd.f32 %v420_v11, %v417_v10 }
 0x10e   :  { %422 = vadd.xlane.f32.xlu0 %v421_v12 }
 0x197   :  { %v423_v19 = vpop.xlane.xlu0 %422 }
 0x198   :  { %v425_v20 = vmul.f32 0.0052083335, %v423_v19 }
 0x19a   :  { %v426_v21 = vsub.f32 %v417_v10, %v425_v20  ;;  %v427_v22 = vsub.f32 %v418_v9, %v425_v20 }
 0x19c   :  { %v428_v23 = vmul.f32 %v426_v21, %v426_v21  ;;  %v429_v24 = vmul.f32 %v427_v22, %v427_v22 }
 0x19e   :  { %v430_v25 = vsel %vm419_vm0, %v429_v24, 0.0 }
 0x19f   :  { %v431_v26 = vadd.f32 %v430_v25, %v428_v23 }
 0x1a1   :  { %432 = vadd.xlane.f32.xlu0 %v431_v26 }
 0x22a   :  { %v433_v33 = vpop.xlane.xlu0 %432 }
 0x22b   :  { %v434_v34 = vmul.f32 0.0052083335, %v433_v33 }
 0x22d   :  { %v435_v35 = vadd.f32 1e-05, %v434_v34 }
 0x22f   :  { %762 = vrsqrt.f32 %v435_v35 }
 0x23c   :  { %v763_v36 = vpop.eup %762 }
 0x23d   :  { %v438_v37 = vmul.f32 %v763_v36, %v427_v22  ;;  %v437_v38 = vmul.f32 %v763_v36, %v426_v21 }
 0x23f   :  { %v440_v39 = vpack.c.bf16 %v438_v37, %v438_v37  ;;  %v439_v40 = vpack.c.bf16 %v437_v38, %v437_v38 }
 0x241   :  { %672 = vmatprep.mubr.msk.bf16.mxu1 %vm419_vm0, %v440_v39 }
 0x242   :  { %580 = vmatmul.mubr.bf16.vlgmr.msra.gmra.mxu1 %v439_v40 }
 0x302   :  { %v581_v42 = vpop.f32.mrf.mxu1 }
 0x303   :  { %v582_v43 = vadd.f32 %v659_v41, %v581_v42 }
 0x304   :  { %v583_v2 = vpop.f32.mrf.mxu1 }
 0x305   :  { %v587_v44 = vsub.f32 0.0, %v582_v43 }
 0x306   :  { %v584_v45 = vpop.f32.mrf.mxu1 }
 0x307   :  { %v588_v46 = vmul.f32 1.442695, %v587_v44 }
 0x308   :  { %v585_v47 = vpop.f32.mrf.mxu1 }
 0x309   :  { %764 = vpow2.f32 %v588_v46 }
 0x316   :  { %v765_v48 = vpop.eup %764 }
 0x317   :  { %v590_v49 = vadd.f32 1.0, %v765_v48 }
 0x319   :  { %766 = vrcp.f32 %v590_v49 }
 0x326   :  { %v767_v50 = vpop.eup %766 }
 0x327   :  { %593 = vst.msk [vmem:[#allocation2] sm:$0xff] %vm592_vm1, %v767_v50 }
 0x328   :  { %779 = shalt.err (!%p776_p4)
}
 0x329   :  { %603 = dma.vmem_to_hbm [thread:$0]  %s601_s17, 128, %s1038_s5, [#allocation3]  }
 0x32a   :  { %788 = dma.done.wait [#allocation3], 128  }
 0x32b   :  { %789 = vsyncadd [#allocation3], 4294967168 }
 0x32c   :  { %607 = vsyncpa [#allocation3], 1 }

</bundles_post_ra>
